<compile_context>
chip_gen: v6e
topology: v6e:2x2x1
jax: 0.10.0
libtpu: 0.0.40
codegen_flags: <defaults>
</compile_context>

<pallas_src>
import functools
import math

import jax
import jax.numpy as jnp
from jax.experimental import pallas as pl
from jax.experimental.pallas import tpu as pltpu


def _round_up(x, m):
    return ((x + m - 1) // m) * m


def _gemm_bias_act_kernel(p_ref, w_ref, b_ref, o_ref, *, neg_slope):
    # p_ref: (Cred, TN)   im2col patch tile (contraction rows, lane-dense cols)
    # w_ref: (Rout, Cred) rearranged weight (resident across the grid)
    # b_ref: (Rout, 1)    per-output-row bias
    # o_ref: (Rout, TN)   lane-dense output tile
    acc = jnp.dot(w_ref[...], p_ref[...], preferred_element_type=jnp.float32)
    acc = acc + b_ref[...].astype(jnp.float32)          # lane broadcast
    if neg_slope is not None:                            # act = nn.LeakyReLU(neg_slope)
        acc = jnp.where(acc >= 0, acc, jnp.float32(neg_slope) * acc)
    o_ref[...] = acc.astype(o_ref.dtype)


def conv_transpose2d_elr(x_nchw, weight, bias, *, stride, padding, weightgain,
                         norm=None, act_neg_slope=None):
    """Forward of ConvTranspose2dELR (groups=1).

    x_nchw: (B, Cin, H, W); weight: (Cin, Cout, K, K); bias: (Cout,) or (Cout, Ho, Wo).
    Returns (B, Cout, Ho, Wo), matching F.conv_transpose2d + bias + act.
    """
    # TODO(synk): groups > 1 grouped transposed conv not implemented (test config uses groups=1).
    B, Cin, H, W = x_nchw.shape
    _, Cout, K, _ = weight.shape
    s, p = stride, padding
    Ho = (H - 1) * s - 2 * p + K
    Wo = (W - 1) * s - 2 * p + K

    # ---- weight preprocessing (getweight) -- glue ----
    w = weight
    if norm == 'demod':
        nrm = jnp.sqrt(jnp.sum(w * w, axis=(0, 2, 3), keepdims=True))
        w = w / jnp.maximum(nrm, 1e-12)
    w = (w * weightgain).astype(jnp.float32)

    # ---- sub-pixel decomposition bookkeeping (square kernel/stride/padding) ----
    # For output index yo = s*q + t:  kh = s*j + m[t],  yi = q + d[t] - j.
    Q_h = -(-Ho // s)
    Q_w = -(-Wo // s)
    m = [(t + p) % s for t in range(s)]
    d = [(t + p) // s for t in range(s)]
    n_taps = [max(0, -(-(K - m[t]) // s)) for t in range(s)]
    active = [t for t in range(s) if n_taps[t] > 0]
    base = min(d[t] - n_taps[t] + 1 for t in active)
    top = max(d[t] for t in active)
    Un = top - base + 1                                   # union window size per dim

    pad_l = max(0, -base)
    pad_r_h = max(0, (Q_h - 1 + top) - (H - 1))
    pad_r_w = max(0, (Q_w - 1 + top) - (W - 1))
    off = base + pad_l                                    # >= 0

    # ---- dense im2col (no dilation zeros) -> (Un*Un*Cin, B*Qh*Qw) -- glue ----
    x32 = x_nchw.astype(jnp.float32)
    x_zp = jnp.pad(x32, ((0, 0), (0, 0), (pad_l, pad_r_h), (pad_l, pad_r_w)))
    slabs = []
    for uh in range(Un):
        for uw in range(Un):
            slabs.append(x_zp[:, :, off + uh:off + uh + Q_h, off + uw:off + uw + Q_w])
    P = jnp.stack(slabs, axis=0).reshape(Un, Un, B, Cin, Q_h, Q_w)
    P = jnp.transpose(P, (0, 1, 3, 2, 4, 5)).reshape(Un * Un * Cin, B * Q_h * Q_w)

    # ---- per-residue sub-kernels scattered into the union window -- glue ----
    Wq = jnp.zeros((s, s, Cout, Un, Un, Cin), jnp.float32)
    for th in range(s):
        for tw in range(s):
            for jh in range(n_taps[th]):
                for jw in range(n_taps[tw]):
                    kh = s * jh + m[th]
                    kw = s * jw + m[tw]
                    uh = d[th] - jh - base
                    uw = d[tw] - jw - base
                    Wq = Wq.at[th, tw, :, uh, uw, :].set(jnp.transpose(w[:, :, kh, kw]))
    Rout = s * s * Cout
    Cred = Un * Un * Cin
    Wq2 = Wq.reshape(Rout, Cred)

    # ---- bias: tiny per-row column (fused 1-D case) -- glue ----
    fuse_bias = bias.ndim == 1
    if fuse_bias:
        brow = jnp.tile(bias.astype(jnp.float32), s * s).reshape(Rout, 1)
    else:
        brow = jnp.zeros((Rout, 1), jnp.float32)
    fuse_act = fuse_bias and (act_neg_slope is not None)

    # ---- column tiling (batch folded into lanes) ----
    Ncols = B * Q_h * Q_w
    TN = min(2048, _round_up(Ncols, 128))
    Ncols_pad = _round_up(Ncols, TN)
    if Ncols_pad != Ncols:
        P = jnp.pad(P, ((0, 0), (0, Ncols_pad - Ncols)))

    kernel = functools.partial(
        _gemm_bias_act_kernel,
        neg_slope=(act_neg_slope if fuse_act else None))

    # Per-step VMEM: (Cred,TN)+(Rout,TN) f32 blocks (double-buffered) + tiny
    # resident weight/bias -> well under the 32 MiB default scoped VMEM on all
    # generations (including v7x), so no vmem_limit_bytes override is needed.
    Z = pl.pallas_call(
        kernel,
        out_shape=jax.ShapeDtypeStruct((Rout, Ncols_pad), x_nchw.dtype),
        grid=(Ncols_pad // TN,),
        in_specs=[
            pl.BlockSpec((Cred, TN), lambda j: (0, j)),
            pl.BlockSpec((Rout, Cred), lambda j: (0, 0)),
            pl.BlockSpec((Rout, 1), lambda j: (0, 0)),
        ],
        out_specs=pl.BlockSpec((Rout, TN), lambda j: (0, j)),
        compiler_params=pltpu.CompilerParams(dimension_semantics=("parallel",)),
    )(P, Wq2, brow)

    # ---- depth-to-space: rows (th,tw,co) x cols (b,q,qw) -> (B,Cout,Ho,Wo) -- glue ----
    Z = Z[:, :Ncols].reshape(s, s, Cout, B, Q_h, Q_w)
    out = jnp.transpose(Z, (3, 2, 4, 0, 5, 1)).reshape(B, Cout, Q_h * s, Q_w * s)
    out = out[:, :, :Ho, :Wo]

    if not fuse_bias:
        # TODO(synk): ub spatially-varying bias path kept in the XLA wrapper
        # (test config uses a 1-D bias which is fused in-kernel).
        out = out + bias[None].astype(out.dtype)
        if act_neg_slope is not None:
            out = jnp.where(out >= 0, out, act_neg_slope * out)
    elif act_neg_slope is None:
        pass  # bias already fused, no activation
    return out


if __name__ == "__main__":
    # module config: ConvTranspose2dELR(4, 8, kernel_size=4, stride=2, padding=1,
    #                                   act=nn.LeakyReLU(0.2), norm=None, ub=None, groups=1)
    inch, outch, kernel_size, stride, padding = 4, 8, 4, 2, 1
    groups = 1
    neg_slope = 0.2
    norm = None
    B, H, W = 2, 16, 16

    key = jax.random.PRNGKey(0)
    kx, kwkey = jax.random.split(key)

    # deterministic parameter init mirroring __init__ (blockinit of a randn kernel)
    k_small = jax.random.normal(
        kwkey, (inch, outch // groups, kernel_size // stride, kernel_size // stride),
        dtype=jnp.float32)
    weight = jnp.repeat(jnp.repeat(k_small, stride, axis=2), stride, axis=3)  # blockinit
    bias = jnp.zeros((outch,), jnp.float32)                                   # ub=None

    # weightgain = actgain * initgain
    actgain = math.sqrt(2.0 / (1.0 + neg_slope ** 2))  # calculate_gain('leaky_relu', 0.2)
    fan_in = inch * (kernel_size ** 2 / stride ** 2)
    initgain = stride if norm == 'demod' else 1.0 / math.sqrt(fan_in)
    weightgain = actgain * initgain

    x = jax.random.normal(kx, (B, inch, H, W), dtype=jnp.float32)

    out = conv_transpose2d_elr(x, weight, bias, stride=stride, padding=padding,
                               weightgain=weightgain, norm=norm,
                               act_neg_slope=neg_slope)
    out = jax.block_until_ready(out)

    # pure-JAX reference (same math as F.conv_transpose2d + bias + LeakyReLU)
    w_scaled = weight * weightgain
    w_conv = jnp.transpose(w_scaled, (1, 0, 2, 3))[:, :, ::-1, ::-1]  # (Cout, Cin, K, K), flipped
    ref_pad = kernel_size - 1 - padding
    ref = jax.lax.conv_general_dilated(
        x, w_conv, window_strides=(1, 1),
        padding=((ref_pad, ref_pad), (ref_pad, ref_pad)),
        lhs_dilation=(stride, stride),
        dimension_numbers=('NCHW', 'OIHW', 'NCHW'))
    ref = ref + bias[None, :, None, None]
    ref = jnp.where(ref >= 0, ref, neg_slope * ref)

    assert out.shape == ref.shape, (out.shape, ref.shape)
    assert float(jnp.max(jnp.abs(out - ref))) < 1e-3
    print("KERNEL_OK")
</pallas_src>

<mosaic_0001>
module attributes {stable_mosaic.version = 11 : i64} {
  func.func @_gemm_bias_act_kernel(%arg0: i32, %arg1: memref<36x512xf32, #tpu.memory_space<vmem>>, %arg2: memref<32x36xf32, #tpu.memory_space<vmem>>, %arg3: memref<32x1xf32, #tpu.memory_space<vmem>>, %arg4: memref<32x512xf32, #tpu.memory_space<vmem>>) attributes {dimension_semantics = [#tpu.dimension_semantics<parallel>], iteration_bounds = array<i64: 1>, scalar_prefetch = 0 : i64, scratch_operands = 0 : i64, tpu.core_type = #tpu.core_type<tc>, window_params = [{transform_indices = @transform_0, window_bounds = array<i64: 36, 512>}, {pipeline_mode = #tpu.pipeline_mode<synchronous>, transform_indices = @transform_1, window_bounds = array<i64: 32, 36>}, {pipeline_mode = #tpu.pipeline_mode<synchronous>, transform_indices = @transform_2, window_bounds = array<i64: 32, 1>}, {transform_indices = @transform_3, window_bounds = array<i64: 32, 512>}]} {
    %c0 = arith.constant 0 : index
    %c0_0 = arith.constant 0 : index
    %0 = vector.load %arg2[%c0, %c0_0] : memref<32x36xf32, #tpu.memory_space<vmem>>, vector<32x36xf32>
    %c0_1 = arith.constant 0 : index
    %c0_2 = arith.constant 0 : index
    %1 = vector.load %arg1[%c0_1, %c0_2] : memref<36x512xf32, #tpu.memory_space<vmem>>, vector<36x512xf32>
    %cst = arith.constant dense<0.000000e+00> : vector<32x512xf32>
    %2 = tpu.matmul %0, %1, %cst {dimension_numbers = #tpu.dot_dimension_numbers<[1], [0], [0], [1], [0, 0, 1, 1], [], []>} : vector<32x36xf32>, vector<36x512xf32>, vector<32x512xf32> -> vector<32x512xf32>
    %c0_3 = arith.constant 0 : index
    %c0_4 = arith.constant 0 : index
    %3 = vector.load %arg3[%c0_3, %c0_4] : memref<32x1xf32, #tpu.memory_space<vmem>>, vector<32x1xf32>
    %4 = vector.broadcast %3 : vector<32x1xf32> to vector<32x512xf32>
    %5 = arith.addf %2, %4 : vector<32x512xf32>
    %cst_5 = arith.constant 0.000000e+00 : f32
    %6 = vector.broadcast %cst_5 : f32 to vector<32x512xf32>
    %7 = arith.cmpf oge, %5, %6 : vector<32x512xf32>
    %cst_6 = arith.constant 2.000000e-01 : f32
    %8 = vector.broadcast %cst_6 : f32 to vector<32x512xf32>
    %9 = arith.mulf %8, %5 : vector<32x512xf32>
    %10 = arith.select %7, %5, %9 : vector<32x512xi1>, vector<32x512xf32>
    %c0_7 = arith.constant 0 : index
    %c0_8 = arith.constant 0 : index
    %11 = vector.load %arg4[%c0_7, %c0_8] : memref<32x512xf32, #tpu.memory_space<vmem>>, vector<32x512xf32>
    tpu.vector_store %arg4[%c0_7, %c0_8], %10 {strides = array<i32>} : memref<32x512xf32, #tpu.memory_space<vmem>>, vector<32x512xf32>,
    return
  }
  func.func @transform_0(%arg0: i32) -> (i32, i32) {
    %c0_i32 = arith.constant 0 : i32
    %c0_i32_0 = arith.constant 0 : i32
    return %c0_i32, %arg0 : i32, i32
  }
  func.func @transform_1(%arg0: i32) -> (i32, i32) {
    %c0_i32 = arith.constant 0 : i32
    %c0_i32_0 = arith.constant 0 : i32
    %c0_i32_1 = arith.constant 0 : i32
    return %c0_i32, %c0_i32_0 : i32, i32
  }
  func.func @transform_2(%arg0: i32) -> (i32, i32) {
    %c0_i32 = arith.constant 0 : i32
    %c0_i32_0 = arith.constant 0 : i32
    %c0_i32_1 = arith.constant 0 : i32
    return %c0_i32, %c0_i32_0 : i32, i32
  }
  func.func @transform_3(%arg0: i32) -> (i32, i32) {
    %c0_i32 = arith.constant 0 : i32
    %c0_i32_0 = arith.constant 0 : i32
    return %c0_i32, %arg0 : i32, i32
  }
}

</mosaic_0001>

<bundles_post_ra>
// kernel: tpu_custom_call.1
= control target key start
LH: loop header
LB: loop body
LE: loop exit
PB: predicated region body
PF: predicated region fallthrough
CT: control target
= control target key end

     0   :  { %8 = vsyncpa [#allocation3], 0  ;;  %s504_s0 = inlined_call_operand.hbm [shape: f32[36,512], index: 0, kind: input, shape index: {}]   ;;  %s505_s1 = inlined_call_operand.vmem [shape: f32[32,36], index: 1, kind: input, shape index: {}]   ;;  %s506_s2 = inlined_call_operand.vmem [shape: f32[32,1], index: 2, kind: input, shape index: {}]   ;;  %s507_s3 = inlined_call_operand.hbm [shape: f32[32,512], index: 3, kind: output, shape index: {}]  }
   0x1   :  { %9 = vsyncpa [#allocation4], 0  ;;  %s426_s12 = smov [#allocation2]  }
   0x2   :  { %s15_s13 = sshll.u32 %s426_s12, 4  ;;  %s16_s13 = int_to_ptr.vmem [resolvable:$true] %s15_s13 }
   0x3   :  { %s390_s14 = scalar_lea.vmem %s16_s13, 2560  ;;  %p395_p1 = scmp.lt.s32.totalorder %s16_s13, %s16_s13 }
   0x4   :  { %p391_p0 = scmp.ne.s32.totalorder %s16_s13, %s390_s14  ;;  %p396_p2 = scmp.lt.s32.totalorder %s390_s14, %s390_s14 }
   0x6   :  { %p397_p3 = por %p396_p2, %p395_p1 }
   0x8   :  { %p398_p4 = pnand %p397_p3, %p391_p0 }
   0xa   :  { %401 = shalt.err (!%p398_p4)
}
   0xb   :  { %s427_s15 = smov 512   ;;  %s428_s16 = smov 32  }
   0xc   :  { %21 = dma.hbm_to_vmem [thread:$0]  %s504_s0, 2560, %s16_s13, [#allocation3], %s427_s15, %s427_s15, %s428_s16  }
   0xd   :  { %422 = dma.done.wait [#allocation3], 2560  }
   0xe   :  { %423 = vsyncadd [#allocation3], 4294964736  ;;  %v429_v0 = vmov 0.0   ;;  %v430_v1 = vmov 0   ;;  %vm90_vm0 = vcmask 1043456   ;;  %v46_v6 = vld [vmem:[#allocation2 + $0x68] sm:$0xff] }
   0xf   :  { %167 = vmatprep.mubr.f32.mxu0 %v429_v0  ;;  %256 = vmatprep.mubr.f32.mxu1 %v429_v0  ;;  %v50_v2 = vld [vmem:[#allocation2 + $0x88] sm:$0xf]  ;;  %v52_v3 = vld [vmem:[#allocation2 + $0x98] sm:$0xf]  ;;  %v49_v4 = vld [vmem:[#allocation2 + $0x80] sm:$0xf] }
  0x10   :  { %380 = vset.pattern.permute.xlu0 %v430_v1  ;;  %381 = vset.pattern.permute.xlu1 %v430_v1  ;;  %v51_v5 = vld [vmem:[#allocation2 + $0x90] sm:$0xf]  ;;  %v48_v7 = vld [vmem:[#allocation2 + $0x78] sm:$0xff]  ;;  %v45_v8 = vld [vmem:[#allocation2 + $0x60] sm:$0xff]  ;;  %vm77_vm1 = vcmask 293888  }
  0x11   :  { %362 = vmatprep.subr.msk.mxu0 %vm90_vm0, %v50_v2  ;;  %368 = vmatprep.subr.msk.mxu1 %vm90_vm0, %v52_v3  ;;  %v47_v9 = vld [vmem:[#allocation2 + $0x70] sm:$0xff]  ;;  %v42_v10 = vld [vmem:[#allocation2 + $0x48] sm:$0xff]  ;;  %v44_v11 = vld [vmem:[#allocation2 + $0x58] sm:$0xff] }
  0x12   :  { %363 = vmatpush1.msk.msra.mxu0 %vm90_vm0, %v49_v4  ;;  %369 = vmatpush1.msk.msra.mxu1 %vm90_vm0, %v51_v5  ;;  %v41_v12 = vld [vmem:[#allocation2 + $0x40] sm:$0xff]  ;;  %v43_v13 = vld [vmem:[#allocation2 + $0x50] sm:$0xff]  ;;  %v38_v14 = vld [vmem:[#allocation2 + $0x28] sm:$0xff] }
  0x13   :  { %127 = vmatprep.subr.mxu0 %v46_v6  ;;  %216 = vmatprep.subr.mxu1 %v48_v7  ;;  %v40_v15 = vld [vmem:[#allocation2 + $0x38] sm:$0xff]  ;;  %v37_v16 = vld [vmem:[#allocation2 + $0x20] sm:$0xff]  ;;  %v39_v17 = vld [vmem:[#allocation2 + $0x30] sm:$0xff] }
  0x14   :  { %128 = vmatpush1.msra.mxu0 %v45_v8  ;;  %217 = vmatpush1.msra.mxu1 %v47_v9  ;;  %v34_v18 = vld [vmem:[#allocation2 + $0x8] sm:$0xff]  ;;  %v36_v19 = vld [vmem:[#allocation2 + $0x18] sm:$0xff]  ;;  %v33_v20 = vld [vmem:[#allocation2] sm:$0xff] }
  0x15   :  { %129 = vmatprep.subr.mxu0 %v42_v10  ;;  %218 = vmatprep.subr.mxu1 %v44_v11  ;;  %v35_v21 = vld [vmem:[#allocation2 + $0x10] sm:$0xff]  ;;  %v29_v22 = vld [vmem:[%s505_s1] sm:$0xff]  ;;  %v30_v25 = vld [vmem:[%s505_s1 + $0x8] sm:$0xff] }
  0x16   :  { %130 = vmatpush1.msra.mxu0 %v41_v12  ;;  %219 = vmatpush1.msra.mxu1 %v43_v13  ;;  %v53_v23 = vld [vmem:[%s506_s2] sm:$0xff]  ;;  %v55_v24 = vld [vmem:[%s506_s2 + $0x10] sm:$0xff]  ;;  %v54_v26 = vld [vmem:[%s506_s2 + $0x8] sm:$0xff] }
  0x17   :  { %131 = vmatprep.subr.mxu0 %v38_v14  ;;  %220 = vmatprep.subr.mxu1 %v40_v15  ;;  %v56_v27 = vld [vmem:[%s506_s2 + $0x18] sm:$0xff]  ;;  %v31_v28 = vld [vmem:[%s505_s1 + $0x10] sm:$0xff] }
  0x18   :  { %132 = vmatpush1.msra.mxu0 %v37_v16  ;;  %221 = vmatpush1.msra.mxu1 %v39_v17  ;;  %v32_v29 = vld [vmem:[%s505_s1 + $0x18] sm:$0xff]  ;;  %s431_s1 = smov [#allocation5]  }
  0x19   :  { %133 = vmatprep.subr.mxu0 %v34_v18  ;;  %222 = vmatprep.subr.mxu1 %v36_v19  ;;  %s350_s6 = sshll.u32 %s431_s1, 4  ;;  %s351_s6 = int_to_ptr.vmem [resolvable:$true] %s350_s6 }
  0x1a   :  { %134 = vmatpush1.msra.mxu0 %v33_v20  ;;  %223 = vmatpush1.msra.mxu1 %v35_v21  ;;  %s402_s7 = scalar_lea.vmem %s351_s6, 2048  ;;  %p407_p6 = scmp.lt.s32.totalorder %s351_s6, %s351_s6 }
  0x1b   :  { %364 = vmatmul.mubr.msk.f32.vlgmr.msra.gmra.mxu0 %vm77_vm1, %v29_v22  ;;  %370 = vmatmul.mubr.msk.f32.vlgmr.msra.gmra.mxu1 %vm77_vm1, %v29_v22  ;;  %p403_p5 = scmp.ne.s32.totalorder %s351_s6, %s402_s7  ;;  %p408_p7 = scmp.lt.s32.totalorder %s402_s7, %s402_s7 }
  0x1c   :  { %173 = vmatprep.mubr.f32.mxu0 %v429_v0  ;;  %262 = vmatprep.mubr.f32.mxu1 %v429_v0 }
  0x1d   :  { %59 = vperm.xlu0 %380, %v53_v23   ;;  %69 = vperm.xlu1 %381, %v55_v24   ;;  %p409_p8 = por %p408_p7, %p407_p6 }
  0x1f   :  { %365 = vmatmul.mubr.msk.f32.gmra.mxu0 %vm77_vm1, %v30_v25  ;;  %371 = vmatmul.mubr.msk.f32.gmra.mxu1 %vm77_vm1, %v30_v25  ;;  %p410_p9 = pnand %p409_p8, %p403_p5 }
  0x20   :  { %179 = vmatprep.mubr.f32.mxu0 %v429_v0  ;;  %268 = vmatprep.mubr.f32.mxu1 %v429_v0 }
  0x21   :  { %64 = vperm.xlu0 %380, %v54_v26   ;;  %74 = vperm.xlu1 %381, %v56_v27  }
  0x23   :  { %366 = vmatmul.mubr.msk.f32.gmra.mxu0 %vm77_vm1, %v31_v28  ;;  %372 = vmatmul.mubr.msk.f32.gmra.mxu1 %vm77_vm1, %v31_v28 }
  0x24   :  { %185 = vmatprep.mubr.f32.mxu0 %v429_v0  ;;  %274 = vmatprep.mubr.f32.mxu1 %v429_v0 }
  0x27   :  { %367 = vmatmul.mubr.msk.f32.gmra.mxu0 %vm77_vm1, %v32_v29  ;;  %373 = vmatmul.mubr.msk.f32.gmra.mxu1 %vm77_vm1, %v32_v29 }
  0x98   :  { %v60_v30 = vpop.permute.xlu0 %59  ;;  %v70_v48 = vpop.permute.xlu1 %69 }
  0x9c   :  { %v65_v35 = vpop.permute.xlu0 %64  ;;  %v75_v7 = vpop.permute.xlu1 %74 }
  0xdb   :  { %v169_v31 = vpop.f32.mrf.mxu0  ;;  %v258_v32 = vpop.f32.mrf.mxu1 }
  0xdc   :  { %v170_v33 = vadd.f32 %v169_v31, %v60_v30  ;;  %v259_v34 = vadd.f32 %v258_v32, %v60_v30 }
  0xdd   :  { %v171_v36 = vpop.f32.mrf.mxu0  ;;  %v260_v37 = vpop.f32.mrf.mxu1 }
  0xde   :  { %vm281_vm2 = vcmp.ge.f32.partialorder %v170_v33, 0.0  ;;  %v297_v38 = vmul.f32 0.2, %v170_v33  ;;  %vm283_vm3 = vcmp.ge.f32.partialorder %v259_v34, 0.0  ;;  %v299_v39 = vmul.f32 0.2, %v259_v34 }
  0xdf   :  { %v172_v40 = vadd.f32 %v171_v36, %v60_v30  ;;  %v261_v41 = vadd.f32 %v260_v37, %v60_v30  ;;  %v175_v42 = vpop.f32.mrf.mxu0  ;;  %v264_v43 = vpop.f32.mrf.mxu1 }
  0xe0   :  { %v313_v44 = vsel %vm281_vm2, %v170_v33, %v297_v38  ;;  %v315_v45 = vsel %vm283_vm3, %v259_v34, %v299_v39  ;;  %v176_v46 = vadd.f32 %v175_v42, %v65_v35  ;;  %v265_v47 = vadd.f32 %v264_v43, %v65_v35 }
  0xe1   :  { %329 = vst [vmem:[#allocation5] sm:$0xff] %v313_v44  ;;  %331 = vst [vmem:[#allocation5 + $0x10] sm:$0xff] %v315_v45  ;;  %vm282_vm4 = vcmp.ge.f32.partialorder %v172_v40, 0.0  ;;  %v298_v49 = vmul.f32 0.2, %v172_v40  ;;  %vm284_vm5 = vcmp.ge.f32.partialorder %v261_v41, 0.0  ;;  %v177_v51 = vpop.f32.mrf.mxu0  ;;  %v266_v52 = vpop.f32.mrf.mxu1 }
  0xe2   :  { %v300_v50 = vmul.f32 0.2, %v261_v41  ;;  %vm285_vm6 = vcmp.ge.f32.partialorder %v176_v46, 0.0  ;;  %v301_v53 = vmul.f32 0.2, %v176_v46  ;;  %vm287_vm7 = vcmp.ge.f32.partialorder %v265_v47, 0.0 }
  0xe3   :  { %v303_v54 = vmul.f32 0.2, %v265_v47  ;;  %v314_v55 = vsel %vm282_vm4, %v172_v40, %v298_v49  ;;  %v178_v57 = vadd.f32 %v177_v51, %v65_v35  ;;  %v267_v58 = vadd.f32 %v266_v52, %v65_v35  ;;  %v181_v59 = vpop.f32.mrf.mxu0  ;;  %v270_v60 = vpop.f32.mrf.mxu1 }
  0xe4   :  { %v316_v56 = vsel %vm284_vm5, %v261_v41, %v300_v50  ;;  %330 = vst [vmem:[#allocation5 + $0x8] sm:$0xff] %v314_v55  ;;  %v317_v61 = vsel %vm285_vm6, %v176_v46, %v301_v53  ;;  %v182_v63 = vadd.f32 %v181_v59, %v70_v48  ;;  %v271_v0 = vadd.f32 %v270_v60, %v70_v48 }
  0xe5   :  { %332 = vst [vmem:[#allocation5 + $0x18] sm:$0xff] %v316_v56  ;;  %v319_v62 = vsel %vm287_vm7, %v265_v47, %v303_v54  ;;  %333 = vst [vmem:[#allocation5 + $0x20] sm:$0xff] %v317_v61  ;;  %vm286_vm8 = vcmp.ge.f32.partialorder %v178_v57, 0.0  ;;  %v302_v1 = vmul.f32 0.2, %v178_v57  ;;  %vm288_vm9 = vcmp.ge.f32.partialorder %v267_v58, 0.0  ;;  %v183_v3 = vpop.f32.mrf.mxu0  ;;  %v272_v4 = vpop.f32.mrf.mxu1 }
  0xe6   :  { %335 = vst [vmem:[#allocation5 + $0x30] sm:$0xff] %v319_v62  ;;  %v304_v2 = vmul.f32 0.2, %v267_v58  ;;  %vm289_vm10 = vcmp.ge.f32.partialorder %v182_v63, 0.0  ;;  %v305_v5 = vmul.f32 0.2, %v182_v63  ;;  %v184_v10 = vadd.f32 %v183_v3, %v70_v48 }
  0xe7   :  { %vm291_vm11 = vcmp.ge.f32.partialorder %v271_v0, 0.0  ;;  %v307_v6 = vmul.f32 0.2, %v271_v0  ;;  %v318_v8 = vsel %vm286_vm8, %v178_v57, %v302_v1  ;;  %v273_v11 = vadd.f32 %v272_v4, %v70_v48  ;;  %v187_v12 = vpop.f32.mrf.mxu0  ;;  %v276_v13 = vpop.f32.mrf.mxu1 }
  0xe8   :  { %v320_v9 = vsel %vm288_vm9, %v267_v58, %v304_v2  ;;  %334 = vst [vmem:[#allocation5 + $0x28] sm:$0xff] %v318_v8  ;;  %v321_v14 = vsel %vm289_vm10, %v182_v63, %v305_v5  ;;  %v188_v16 = vadd.f32 %v187_v12, %v75_v7  ;;  %v277_v17 = vadd.f32 %v276_v13, %v75_v7 }
  0xe9   :  { %336 = vst [vmem:[#allocation5 + $0x38] sm:$0xff] %v320_v9  ;;  %v323_v15 = vsel %vm291_vm11, %v271_v0, %v307_v6  ;;  %337 = vst [vmem:[#allocation5 + $0x40] sm:$0xff] %v321_v14  ;;  %vm290_vm12 = vcmp.ge.f32.partialorder %v184_v10, 0.0  ;;  %v306_v18 = vmul.f32 0.2, %v184_v10  ;;  %vm292_vm13 = vcmp.ge.f32.partialorder %v273_v11, 0.0  ;;  %v189_v20 = vpop.f32.mrf.mxu0  ;;  %v278_v21 = vpop.f32.mrf.mxu1 }
  0xea   :  { %339 = vst [vmem:[#allocation5 + $0x50] sm:$0xff] %v323_v15  ;;  %v308_v19 = vmul.f32 0.2, %v273_v11  ;;  %vm293_vm14 = vcmp.ge.f32.partialorder %v188_v16, 0.0  ;;  %v309_v22 = vmul.f32 0.2, %v188_v16  ;;  %v190_v26 = vadd.f32 %v189_v20, %v75_v7 }
  0xeb   :  { %vm295_vm15 = vcmp.ge.f32.partialorder %v277_v17, 0.0  ;;  %v311_v23 = vmul.f32 0.2, %v277_v17  ;;  %v322_v24 = vsel %vm290_vm12, %v184_v10, %v306_v18  ;;  %v279_v27 = vadd.f32 %v278_v21, %v75_v7 }
  0xec   :  { %v324_v25 = vsel %vm292_vm13, %v273_v11, %v308_v19  ;;  %338 = vst [vmem:[#allocation5 + $0x48] sm:$0xff] %v322_v24  ;;  %v325_v28 = vsel %vm293_vm14, %v188_v16, %v309_v22  ;;  %vm294_vm0 = vcmp.ge.f32.partialorder %v190_v26, 0.0  ;;  %v310_v30 = vmul.f32 0.2, %v190_v26 }
  0xed   :  { %340 = vst [vmem:[#allocation5 + $0x58] sm:$0xff] %v324_v25  ;;  %v327_v29 = vsel %vm295_vm15, %v277_v17, %v311_v23  ;;  %341 = vst [vmem:[#allocation5 + $0x60] sm:$0xff] %v325_v28  ;;  %vm296_vm1 = vcmp.ge.f32.partialorder %v279_v27, 0.0  ;;  %v312_v31 = vmul.f32 0.2, %v279_v27 }
  0xee   :  { %343 = vst [vmem:[#allocation5 + $0x70] sm:$0xff] %v327_v29  ;;  %v326_v32 = vsel %vm294_vm0, %v190_v26, %v310_v30 }
  0xef   :  { %v328_v33 = vsel %vm296_vm1, %v279_v27, %v312_v31  ;;  %342 = vst [vmem:[#allocation5 + $0x68] sm:$0xff] %v326_v32 }
  0xf0   :  { %344 = vst [vmem:[#allocation5 + $0x78] sm:$0xff] %v328_v33 }
  0xf1   :  { %413 = shalt.err (!%p410_p9)
}
  0xf2   :  { %356 = dma.vmem_to_hbm [thread:$0]  %s351_s6, 2048, %s507_s3, [#allocation4], %s427_s15, %s427_s15, %s428_s16  }
  0xf3   :  { %424 = dma.done.wait [#allocation4], 2048  }
  0xf4   :  { %425 = vsyncadd [#allocation4], 4294965248 }
  0xf5   :  { %360 = vsyncpa [#allocation3], 1 }
  0xf6   :  { %361 = vsyncpa [#allocation4], 1 }

</bundles_post_ra>
